<compile_context>
chip_gen: v7x
topology: tpu7x:2x2x1
jax: 0.10.0
libtpu: 0.0.40
codegen_flags: <defaults>
</compile_context>

<pallas_src>
import jax
import jax.numpy as jnp
from jax.experimental import pallas as pl
from jax.experimental.pallas import tpu as pltpu


def _mse_loss_kernel(delta_hat_ref, action_ref, delta_ref, loss_ref):
    # (TB, A) tile of delta_hat, upcast in-kernel (input stays native in HBM).
    dh = delta_hat_ref[...].astype(jnp.float32)
    act = action_ref[...]                       # (TB, 1) int32
    d = delta_ref[...]                          # (TB, 1) float32

    # One-hot gather along the action (lane) axis: delta_hat[b, action[b]].
    col = jax.lax.broadcasted_iota(jnp.int32, dh.shape, dimension=1)
    gathered = jnp.sum(jnp.where(col == act, dh, 0.0), axis=-1, keepdims=True)

    loss_ref[...] = (gathered - d) ** 2         # (TB, 1) per-sample loss
    # TODO(synk): for very small A a lane-dense (1, TB) output layout would
    # avoid lane-width-1 masked stores; kept (TB, 1) for layout simplicity.


def _choose_block_b(B, A, itemsize):
    """Batch tile size: full B when small, else ~4 MiB per input buffer."""
    if B <= 1024:
        return B                                # single/full blocks are always legal
    target_bytes = 4 * 1024 * 1024              # x2 double-buffers stays well under
    tb = target_bytes // max(1, A * itemsize)   # the 16/32 MiB scoped VMEM defaults
    tb = max(8, min(2048, (tb // 8) * 8))       # multiple of 8 sublanes
    return min(tb, B)


def _mse_loss_pallas(delta_hat, action, delta, *, block_b=None):
    B, A = delta_hat.shape
    itemsize = jnp.dtype(delta_hat.dtype).itemsize
    TB = block_b if block_b is not None else _choose_block_b(B, A, itemsize)
    grid = (pl.cdiv(B, TB),)

    action_2d = action.astype(jnp.int32).reshape(B, 1)
    delta_2d = delta.astype(jnp.float32).reshape(B, 1)

    cost = pl.CostEstimate(
        flops=2 * B * A + 2 * B,
        transcendentals=0,
        bytes_accessed=B * A * itemsize + 3 * B * 4,
    )

    per_elem = pl.pallas_call(
        _mse_loss_kernel,
        out_shape=jax.ShapeDtypeStruct((B, 1), jnp.float32),
        grid=grid,
        in_specs=[
            pl.BlockSpec((TB, A), lambda i: (i, 0)),   # delta_hat tile
            pl.BlockSpec((TB, 1), lambda i: (i, 0)),   # action tile
            pl.BlockSpec((TB, 1), lambda i: (i, 0)),   # delta tile
        ],
        out_specs=pl.BlockSpec((TB, 1), lambda i: (i, 0)),
        compiler_params=pltpu.CompilerParams(
            dimension_semantics=("parallel",),          # megacore / 2-TC sharding
            vmem_limit_bytes=32 * 1024 * 1024,
        ),
        cost_estimate=cost,
    )(delta_hat, action_2d, delta_2d)
    return per_elem


class MSELoss:
    """JAX/Pallas port of the PyTorch MSELoss module."""

    def __init__(self, hyper_params=None):
        self.hyper_params = hyper_params

    def forward(self, delta_hat, y, action, delta, prop, all_prop,
                regressed_rewards, return_mean=True):
        per_elem = _mse_loss_pallas(delta_hat, action, delta)
        if return_mean:
            # Mean over exactly B elements in the wrapper (B floats, ~free);
            # keeps the kernel grid fully parallel and padding-proof.
            return jnp.mean(per_elem)
        return per_elem.reshape(-1)

    __call__ = forward


if __name__ == "__main__":
    key = jax.random.PRNGKey(0)
    loss_mod = MSELoss(hyper_params={})

    # ---- test 1: small f32 case (single block) ----
    B, A = 8, 16
    k1, k2, k3 = jax.random.split(key, 3)
    delta_hat = jax.random.normal(k1, (B, A), dtype=jnp.float32)
    action = jax.random.randint(k2, (B,), 0, A, dtype=jnp.int32)
    delta = jax.random.normal(k3, (B,), dtype=jnp.float32)
    y = prop = all_prop = regressed_rewards = None

    out_mean = loss_mod(delta_hat, y, action, delta, prop, all_prop,
                        regressed_rewards, return_mean=True)
    out_vec = loss_mod(delta_hat, y, action, delta, prop, all_prop,
                       regressed_rewards, return_mean=False)
    jax.block_until_ready(out_mean)
    jax.block_until_ready(out_vec)

    ref_vec = (delta_hat[jnp.arange(B), action] - delta) ** 2
    ref_mean = jnp.mean(ref_vec)
    assert jnp.allclose(out_vec, ref_vec, atol=1e-6), "per-element mismatch"
    assert jnp.allclose(out_mean, ref_mean, atol=1e-6), "mean mismatch"

    # ---- test 2: multi-block grid (exercises double-buffered pipeline) ----
    B2, A2, TB2 = 48, 16, 16
    k4, k5, k6 = jax.random.split(jax.random.PRNGKey(1), 3)
    dh2 = jax.random.normal(k4, (B2, A2), dtype=jnp.bfloat16)  # native bf16 in HBM
    act2 = jax.random.randint(k5, (B2,), 0, A2, dtype=jnp.int32)
    d2 = jax.random.normal(k6, (B2,), dtype=jnp.float32)

    out2 = _mse_loss_pallas(dh2, act2, d2, block_b=TB2).reshape(-1)
    jax.block_until_ready(out2)
    ref2 = (dh2[jnp.arange(B2), act2].astype(jnp.float32) - d2) ** 2
    assert jnp.allclose(out2, ref2, atol=1e-6), "multi-block / bf16 mismatch"

    print("KERNEL_OK")
</pallas_src>

<mosaic_0001>
module attributes {stable_mosaic.version = 11 : i64} {
  func.func @_mse_loss_kernel(%arg0: i32, %arg1: memref<8x16xf32, #tpu.memory_space<vmem>>, %arg2: memref<8x1xi32, #tpu.memory_space<vmem>>, %arg3: memref<8x1xf32, #tpu.memory_space<vmem>>, %arg4: memref<8x1xf32, #tpu.memory_space<vmem>>) attributes {dimension_semantics = [#tpu.dimension_semantics<parallel>], iteration_bounds = array<i64: 1>, scalar_prefetch = 0 : i64, scratch_operands = 0 : i64, tpu.core_type = #tpu.core_type<tc>, window_params = [{transform_indices = @transform_0, window_bounds = array<i64: 8, 16>}, {transform_indices = @transform_1, window_bounds = array<i64: 8, 1>}, {transform_indices = @transform_2, window_bounds = array<i64: 8, 1>}, {transform_indices = @transform_3, window_bounds = array<i64: 8, 1>}]} {
    %c0 = arith.constant 0 : index
    %c0_0 = arith.constant 0 : index
    %0 = vector.load %arg1[%c0, %c0_0] : memref<8x16xf32, #tpu.memory_space<vmem>>, vector<8x16xf32>
    %c0_1 = arith.constant 0 : index
    %c0_2 = arith.constant 0 : index
    %1 = vector.load %arg2[%c0_1, %c0_2] : memref<8x1xi32, #tpu.memory_space<vmem>>, vector<8x1xi32>
    %c0_3 = arith.constant 0 : index
    %c0_4 = arith.constant 0 : index
    %2 = vector.load %arg3[%c0_3, %c0_4] : memref<8x1xf32, #tpu.memory_space<vmem>>, vector<8x1xf32>
    %3 = tpu.iota {dimensions = array<i32: 1>} : vector<8x16xi32>
    %4 = vector.broadcast %1 : vector<8x1xi32> to vector<8x16xi32>
    %5 = arith.cmpi eq, %3, %4 : vector<8x16xi32>
    %cst = arith.constant 0.000000e+00 : f32
    %6 = vector.broadcast %cst : f32 to vector<8x16xf32>
    %7 = arith.select %5, %0, %6 : vector<8x16xi1>, vector<8x16xf32>
    %cst_5 = arith.constant dense<0.000000e+00> : vector<8xf32>
    %8 = vector.multi_reduction <add>, %7, %cst_5 [1] : vector<8x16xf32> to vector<8xf32>
    %9 = vector.shape_cast %8 : vector<8xf32> to vector<8x1xf32>
    %10 = arith.subf %9, %2 : vector<8x1xf32>
    %11 = arith.mulf %10, %10 : vector<8x1xf32>
    %c0_6 = arith.constant 0 : index
    %c0_7 = arith.constant 0 : index
    %12 = vector.load %arg4[%c0_6, %c0_7] : memref<8x1xf32, #tpu.memory_space<vmem>>, vector<8x1xf32>
    tpu.vector_store %arg4[%c0_6, %c0_7], %11 {strides = array<i32>} : memref<8x1xf32, #tpu.memory_space<vmem>>, vector<8x1xf32>,
    return
  }
  func.func @transform_0(%arg0: i32) -> (i32, i32) {
    %c0_i32 = arith.constant 0 : i32
    %c0_i32_0 = arith.constant 0 : i32
    return %arg0, %c0_i32 : i32, i32
  }
  func.func @transform_1(%arg0: i32) -> (i32, i32) {
    %c0_i32 = arith.constant 0 : i32
    %c0_i32_0 = arith.constant 0 : i32
    return %arg0, %c0_i32 : i32, i32
  }
  func.func @transform_2(%arg0: i32) -> (i32, i32) {
    %c0_i32 = arith.constant 0 : i32
    %c0_i32_0 = arith.constant 0 : i32
    return %arg0, %c0_i32 : i32, i32
  }
  func.func @transform_3(%arg0: i32) -> (i32, i32) {
    %c0_i32 = arith.constant 0 : i32
    %c0_i32_0 = arith.constant 0 : i32
    return %arg0, %c0_i32 : i32, i32
  }
}

</mosaic_0001>

<bundles_post_ra>
// kernel: tpu_custom_call.1
= control target key start
LH: loop header
LB: loop body
LE: loop exit
PB: predicated region body
PF: predicated region fallthrough
CT: control target
= control target key end

     0   :  { %v38_v0 = vmov 0   ;;  %v17_v2 = vlaneseq  ;;  %vm24_vm0 = vcmask 130048   ;;  %vm30_vm2 = vcmask 7168   ;;  %s71_s1 = inlined_call_operand.vmem [shape: s32[8,1], index: 1, kind: input, shape index: {}]   ;;  %s72_s0 = inlined_call_operand.vmem [shape: f32[8,16], index: 0, kind: input, shape index: {}]   ;;  %s73_s2 = inlined_call_operand.vmem [shape: f32[8,1], index: 2, kind: input, shape index: {}]   ;;  %s74_s3 = inlined_call_operand.vmem [shape: f32[8,1], index: 3, kind: output, shape index: {}]  }
   0x1   :  { %37 = vset.pattern.permute.xlu0 %v38_v0  ;;  %v15_v1 = vld [vmem:[%s71_s1] sm:$0xff] }
   0x2   :  { %20 = vperm.xlu0 %37, %v15_v1   ;;  %v18_v3 = vand.u32 127, %v17_v2  ;;  %v14_v4 = vld [vmem:[%s72_s0] sm:$0xff] }
   0x3   :  { %v16_v8 = vld [vmem:[%s73_s2] sm:$0xff] }
  0x81   :  { %v21_v5 = vpop.permute.xlu0 %20 }
  0x82   :  { %vm22_vm1 = vcmp.eq.s32.totalorder %v18_v3, %v21_v5 }
  0x83   :  { %v23_v6 = vsel %vm22_vm1, %v14_v4, 0.0 }
  0x84   :  { %v25_v7 = vsel %vm24_vm0, %v23_v6, 0.0 }
  0x85   :  { %26 = vadd.xlane.f32.xlu0 %v25_v7 }
 0x112   :  { %v27_v9 = vpop.xlane.xlu0 %26 }
 0x113   :  { %v28_v10 = vsub.f32 %v27_v9, %v16_v8 }
 0x115   :  { %v29_v11 = vmul.f32 %v28_v10, %v28_v10 }
 0x117   :  { %31 = vst.msk [vmem:[%s74_s3] sm:$0xff] %vm30_vm2, %v29_v11 }

</bundles_post_ra>
